<compile_context>
chip_gen: v7x
topology: tpu7x:2x2x1
jax: 0.10.0
libtpu: 0.0.40
codegen_flags: <defaults>
</compile_context>

<pallas_src>
import jax
import jax.numpy as jnp
from jax.experimental import pallas as pl
from jax.experimental.pallas import tpu as pltpu


def _outconv_vpu_kernel(x_ref, w_ref, b_ref, o_ref):
    """Small-channel path: unrolled VPU FMAs, scalar weights from SMEM.

    x_ref: (C_in, T)  VMEM, pixel axis lane-dense
    w_ref: (C_out, C_in) SMEM
    b_ref: (C_out,)      SMEM
    o_ref: (C_out, T) VMEM
    """
    c_out, c_in = w_ref.shape
    # Load each input-channel row once (lane-dense (1, T) slabs).
    xs = [x_ref[pl.ds(ci, 1), :].astype(jnp.float32) for ci in range(c_in)]
    rows = []
    for co in range(c_out):
        acc = xs[0] * w_ref[co, 0] + b_ref[co]
        for ci in range(1, c_in):
            acc = acc + xs[ci] * w_ref[co, ci]
        rows.append(acc)
    out = jnp.concatenate(rows, axis=0)          # (C_out, T), lane-dense store
    o_ref[...] = out.astype(o_ref.dtype)


def _outconv_mxu_kernel(x_ref, w_ref, b_ref, o_ref):
    """Large-channel path: MXU matmul W @ x, output stays pixel-lane-dense.

    x_ref: (C_in, T) VMEM, w_ref: (C_out, C_in) VMEM, b_ref: (C_out, 1) VMEM
    o_ref: (C_out, T) VMEM
    """
    acc = jnp.dot(w_ref[...], x_ref[...], preferred_element_type=jnp.float32)
    o_ref[...] = (acc + b_ref[...]).astype(o_ref.dtype)


def _pick_tile_hw(hw, c_in, c_out, dtype_bytes, vmem_budget_bytes):
    """Largest multiple-of-128 divisor of hw whose double-buffered in+out tiles
    fit the VMEM budget. Falls back to the full extent if hw % 128 != 0."""
    if hw % 128 != 0:
        # Full-extent block is always a legal block shape (equals array dim).
        # TODO(synk): handle very large non-128-multiple H*W with a ragged tail.
        return hw
    max_elems = max(vmem_budget_bytes // (2 * dtype_bytes * max(c_in + c_out, 1)), 128)
    best = 128
    t = 128
    while t <= hw:
        if hw % t == 0 and t <= max_elems:
            best = t
        t += 128
    return best


def out_conv(x_nchw, weight, bias, *, vmem_budget_bytes=8 * 1024 * 1024):
    """1x1 Conv2d forward (nn.Conv2d(in_channels, out_channels, kernel_size=1)).

    x_nchw : (N, C_in, H, W)
    weight : (C_out, C_in, 1, 1)   (PyTorch conv weight layout)
    bias   : (C_out,)
    returns: (N, C_out, H, W)
    """
    N, C_in, H, W = x_nchw.shape
    C_out = weight.shape[0]
    HW = H * W

    # Free reshapes (contiguous dim merge) -- no HBM transpose passes.
    x = x_nchw.reshape(N, C_in, HW)
    w = weight.reshape(C_out, C_in)

    dtype_bytes = jnp.dtype(x_nchw.dtype).itemsize
    tile_hw = _pick_tile_hw(HW, C_in, C_out, dtype_bytes, vmem_budget_bytes)
    grid = (N, HW // tile_hw)

    use_vpu_path = (C_in * C_out) <= 256

    if use_vpu_path:
        kernel = _outconv_vpu_kernel
        w_spec = pl.BlockSpec(memory_space=pltpu.MemorySpace.SMEM)
        b_spec = pl.BlockSpec(memory_space=pltpu.MemorySpace.SMEM)
        w_arg, b_arg = w, bias
    else:
        kernel = _outconv_mxu_kernel
        w_spec = pl.BlockSpec((C_out, C_in), lambda n, t: (0, 0))
        b_spec = pl.BlockSpec((C_out, 1), lambda n, t: (0, 0))
        w_arg, b_arg = w, bias.reshape(C_out, 1)

    out = pl.pallas_call(
        kernel,
        out_shape=jax.ShapeDtypeStruct((N, C_out, HW), x_nchw.dtype),
        grid_spec=pltpu.PrefetchScalarGridSpec(
            num_scalar_prefetch=0,
            grid=grid,
            in_specs=[
                # (None, C_in, tile_hw): batch dim squeezed, pixel axis lane-dense.
                pl.BlockSpec((None, C_in, tile_hw), lambda n, t: (n, 0, t)),
                w_spec,
                b_spec,
            ],
            out_specs=pl.BlockSpec((None, C_out, tile_hw), lambda n, t: (n, 0, t)),
        ),
        compiler_params=pltpu.CompilerParams(
            dimension_semantics=("parallel", "parallel"),
            vmem_limit_bytes=32 * 1024 * 1024,
        ),
    )(x, w_arg, b_arg)

    return out.reshape(N, C_out, H, W)


if __name__ == "__main__":
    key = jax.random.PRNGKey(0)
    k_x, k_w, k_b = jax.random.split(key, 3)

    N, C_in, C_out, H, W = 2, 4, 3, 16, 16

    x = jax.random.normal(k_x, (N, C_in, H, W), dtype=jnp.float32)
    # Deterministic synthetic params matching nn.Conv2d(in, out, kernel_size=1).
    weight = jax.random.normal(k_w, (C_out, C_in, 1, 1), dtype=jnp.float32) * 0.1
    bias = jax.random.normal(k_b, (C_out,), dtype=jnp.float32) * 0.1

    y = out_conv(x, weight, bias)
    y = jax.block_until_ready(y)

    # Reference: plain-JAX 1x1 conv over channels.
    y_ref = (jnp.einsum("nihw,oi->nohw", x, weight.reshape(C_out, C_in))
             + bias[None, :, None, None])
    assert y.shape == (N, C_out, H, W)
    assert jnp.allclose(y, y_ref, atol=1e-5, rtol=1e-5)

    print("KERNEL_OK")
</pallas_src>

<mosaic_0001>
module attributes {stable_mosaic.version = 11 : i64} {
  func.func @_outconv_vpu_kernel(%arg0: i32, %arg1: i32, %arg2: memref<1x4x256xf32, #tpu.memory_space<vmem>>, %arg3: memref<3x4xf32, #tpu.memory_space<smem>>, %arg4: memref<3xf32, #tpu.memory_space<smem>>, %arg5: memref<1x3x256xf32, #tpu.memory_space<vmem>>) attributes {dimension_semantics = [#tpu.dimension_semantics<parallel>, #tpu.dimension_semantics<parallel>], iteration_bounds = array<i64: 2, 1>, scalar_prefetch = 0 : i64, scratch_operands = 0 : i64, tpu.core_type = #tpu.core_type<tc>, window_params = [{transform_indices = @transform_0, window_bounds = array<i64: 1, 4, 256>}, {transform_indices = @transform_1, window_bounds = array<i64: 3, 4>}, {transform_indices = @transform_2, window_bounds = array<i64: 3>}, {transform_indices = @transform_3, window_bounds = array<i64: 1, 3, 256>}]} {
    %c0 = arith.constant 0 : index
    %c0_0 = arith.constant 0 : index
    %c0_1 = arith.constant 0 : index
    %0 = vector.load %arg2[%c0, %c0_0, %c0_1] : memref<1x4x256xf32, #tpu.memory_space<vmem>>, vector<1x1x256xf32>
    %1 = vector.shape_cast %0 : vector<1x1x256xf32> to vector<1x256xf32>
    %c0_2 = arith.constant 0 : index
    %c1 = arith.constant 1 : index
    %c0_3 = arith.constant 0 : index
    %2 = vector.load %arg2[%c0_2, %c1, %c0_3] : memref<1x4x256xf32, #tpu.memory_space<vmem>>, vector<1x1x256xf32>
    %3 = vector.shape_cast %2 : vector<1x1x256xf32> to vector<1x256xf32>
    %c0_4 = arith.constant 0 : index
    %c2 = arith.constant 2 : index
    %c0_5 = arith.constant 0 : index
    %4 = vector.load %arg2[%c0_4, %c2, %c0_5] : memref<1x4x256xf32, #tpu.memory_space<vmem>>, vector<1x1x256xf32>
    %5 = vector.shape_cast %4 : vector<1x1x256xf32> to vector<1x256xf32>
    %c0_6 = arith.constant 0 : index
    %c3 = arith.constant 3 : index
    %c0_7 = arith.constant 0 : index
    %6 = vector.load %arg2[%c0_6, %c3, %c0_7] : memref<1x4x256xf32, #tpu.memory_space<vmem>>, vector<1x1x256xf32>
    %7 = vector.shape_cast %6 : vector<1x1x256xf32> to vector<1x256xf32>
    %c0_8 = arith.constant 0 : index
    %c0_9 = arith.constant 0 : index
    %8 = memref.load %arg3[%c0_8, %c0_9] : memref<3x4xf32, #tpu.memory_space<smem>>
    %9 = vector.broadcast %8 : f32 to vector<1x256xf32>
    %10 = arith.mulf %1, %9 : vector<1x256xf32>
    %c0_10 = arith.constant 0 : index
    %11 = memref.load %arg4[%c0_10] : memref<3xf32, #tpu.memory_space<smem>>
    %12 = vector.broadcast %11 : f32 to vector<1x256xf32>
    %13 = arith.addf %10, %12 : vector<1x256xf32>
    %c0_11 = arith.constant 0 : index
    %c1_12 = arith.constant 1 : index
    %14 = memref.load %arg3[%c0_11, %c1_12] : memref<3x4xf32, #tpu.memory_space<smem>>
    %15 = vector.broadcast %14 : f32 to vector<1x256xf32>
    %16 = arith.mulf %3, %15 : vector<1x256xf32>
    %17 = arith.addf %13, %16 : vector<1x256xf32>
    %c0_13 = arith.constant 0 : index
    %c2_14 = arith.constant 2 : index
    %18 = memref.load %arg3[%c0_13, %c2_14] : memref<3x4xf32, #tpu.memory_space<smem>>
    %19 = vector.broadcast %18 : f32 to vector<1x256xf32>
    %20 = arith.mulf %5, %19 : vector<1x256xf32>
    %21 = arith.addf %17, %20 : vector<1x256xf32>
    %c0_15 = arith.constant 0 : index
    %c3_16 = arith.constant 3 : index
    %22 = memref.load %arg3[%c0_15, %c3_16] : memref<3x4xf32, #tpu.memory_space<smem>>
    %23 = vector.broadcast %22 : f32 to vector<1x256xf32>
    %24 = arith.mulf %7, %23 : vector<1x256xf32>
    %25 = arith.addf %21, %24 : vector<1x256xf32>
    %c1_17 = arith.constant 1 : index
    %c0_18 = arith.constant 0 : index
    %26 = memref.load %arg3[%c1_17, %c0_18] : memref<3x4xf32, #tpu.memory_space<smem>>
    %27 = vector.broadcast %26 : f32 to vector<1x256xf32>
    %28 = arith.mulf %1, %27 : vector<1x256xf32>
    %c1_19 = arith.constant 1 : index
    %29 = memref.load %arg4[%c1_19] : memref<3xf32, #tpu.memory_space<smem>>
    %30 = vector.broadcast %29 : f32 to vector<1x256xf32>
    %31 = arith.addf %28, %30 : vector<1x256xf32>
    %c1_20 = arith.constant 1 : index
    %c1_21 = arith.constant 1 : index
    %32 = memref.load %arg3[%c1_20, %c1_21] : memref<3x4xf32, #tpu.memory_space<smem>>
    %33 = vector.broadcast %32 : f32 to vector<1x256xf32>
    %34 = arith.mulf %3, %33 : vector<1x256xf32>
    %35 = arith.addf %31, %34 : vector<1x256xf32>
    %c1_22 = arith.constant 1 : index
    %c2_23 = arith.constant 2 : index
    %36 = memref.load %arg3[%c1_22, %c2_23] : memref<3x4xf32, #tpu.memory_space<smem>>
    %37 = vector.broadcast %36 : f32 to vector<1x256xf32>
    %38 = arith.mulf %5, %37 : vector<1x256xf32>
    %39 = arith.addf %35, %38 : vector<1x256xf32>
    %c1_24 = arith.constant 1 : index
    %c3_25 = arith.constant 3 : index
    %40 = memref.load %arg3[%c1_24, %c3_25] : memref<3x4xf32, #tpu.memory_space<smem>>
    %41 = vector.broadcast %40 : f32 to vector<1x256xf32>
    %42 = arith.mulf %7, %41 : vector<1x256xf32>
    %43 = arith.addf %39, %42 : vector<1x256xf32>
    %c2_26 = arith.constant 2 : index
    %c0_27 = arith.constant 0 : index
    %44 = memref.load %arg3[%c2_26, %c0_27] : memref<3x4xf32, #tpu.memory_space<smem>>
    %45 = vector.broadcast %44 : f32 to vector<1x256xf32>
    %46 = arith.mulf %1, %45 : vector<1x256xf32>
    %c2_28 = arith.constant 2 : index
    %47 = memref.load %arg4[%c2_28] : memref<3xf32, #tpu.memory_space<smem>>
    %48 = vector.broadcast %47 : f32 to vector<1x256xf32>
    %49 = arith.addf %46, %48 : vector<1x256xf32>
    %c2_29 = arith.constant 2 : index
    %c1_30 = arith.constant 1 : index
    %50 = memref.load %arg3[%c2_29, %c1_30] : memref<3x4xf32, #tpu.memory_space<smem>>
    %51 = vector.broadcast %50 : f32 to vector<1x256xf32>
    %52 = arith.mulf %3, %51 : vector<1x256xf32>
    %53 = arith.addf %49, %52 : vector<1x256xf32>
    %c2_31 = arith.constant 2 : index
    %c2_32 = arith.constant 2 : index
    %54 = memref.load %arg3[%c2_31, %c2_32] : memref<3x4xf32, #tpu.memory_space<smem>>
    %55 = vector.broadcast %54 : f32 to vector<1x256xf32>
    %56 = arith.mulf %5, %55 : vector<1x256xf32>
    %57 = arith.addf %53, %56 : vector<1x256xf32>
    %c2_33 = arith.constant 2 : index
    %c3_34 = arith.constant 3 : index
    %58 = memref.load %arg3[%c2_33, %c3_34] : memref<3x4xf32, #tpu.memory_space<smem>>
    %59 = vector.broadcast %58 : f32 to vector<1x256xf32>
    %60 = arith.mulf %7, %59 : vector<1x256xf32>
    %61 = arith.addf %57, %60 : vector<1x256xf32>
    %62 = tpu.concatenate %25, %43, %61 in 0 : vector<1x256xf32>, vector<1x256xf32>, vector<1x256xf32> -> vector<3x256xf32>
    %c0_35 = arith.constant 0 : index
    %c0_36 = arith.constant 0 : index
    %c0_37 = arith.constant 0 : index
    %63 = vector.load %arg5[%c0_35, %c0_36, %c0_37] : memref<1x3x256xf32, #tpu.memory_space<vmem>>, vector<1x3x256xf32>
    %64 = vector.shape_cast %63 : vector<1x3x256xf32> to vector<3x256xf32>
    %65 = vector.shape_cast %62 : vector<3x256xf32> to vector<1x3x256xf32>
    tpu.vector_store %arg5[%c0_35, %c0_36, %c0_37], %65 {strides = array<i32>} : memref<1x3x256xf32, #tpu.memory_space<vmem>>, vector<1x3x256xf32>,
    return
  }
  func.func @transform_0(%arg0: i32, %arg1: i32) -> (i32, i32, i32) {
    %c0_i32 = arith.constant 0 : i32
    %c0_i32_0 = arith.constant 0 : i32
    return %arg0, %c0_i32, %arg1 : i32, i32, i32
  }
  func.func @transform_1(%arg0: i32, %arg1: i32) -> (i32, i32) {
    %c0_i32 = arith.constant 0 : i32
    %c0_i32_0 = arith.constant 0 : i32
    %c0_i32_1 = arith.constant 0 : i32
    return %c0_i32, %c0_i32_0 : i32, i32
  }
  func.func @transform_2(%arg0: i32, %arg1: i32) -> i32 {
    %c0_i32 = arith.constant 0 : i32
    %c0_i32_0 = arith.constant 0 : i32
    return %c0_i32 : i32
  }
  func.func @transform_3(%arg0: i32, %arg1: i32) -> (i32, i32, i32) {
    %c0_i32 = arith.constant 0 : i32
    %c0_i32_0 = arith.constant 0 : i32
    return %arg0, %c0_i32, %arg1 : i32, i32, i32
  }
}

</mosaic_0001>

<bundles_post_ra>
// kernel: tpu_custom_call.1
= control target key start
LH: loop header
LB: loop body
LE: loop exit
PB: predicated region body
PF: predicated region fallthrough
CT: control target
= control target key end

     0   :  { %8 = vsyncpa [#allocation3], 0  ;;  %s903_s0 = inlined_call_operand.hbm [shape: f32[2,4,256], index: 0, kind: input, shape index: {}]   ;;  %s904_s1 = inlined_call_operand.hbm [shape: f32[3,4], index: 1, kind: input, shape index: {}]   ;;  %s905_s2 = inlined_call_operand.vmem [shape: f32[3], index: 2, kind: input, shape index: {}]   ;;  %s906_s3 = inlined_call_operand.vmem [shape: f32[2,3,256], index: 3, kind: output, shape index: {}]  }
   0x1   :  { %10 = vsyncpa [#allocation3 + $0x1], 0 }
   0x2   :  { %11 = vsyncpa [#allocation4], 0 }
   0x3   :  { %12 = vsyncpa [#allocation5], 0  ;;  %s718_s12 = smov 0   ;;  %s720_s13 = smov 0  }
   0x4   :  { %s722_s14 = smov 0   ;;  %s724_s15 = smov 0  }
   0x5   :  { %s726_s16 = smov 0   ;;  %s728_s17 = smov 0  }
   0x6 LB: > { %s466_s18 = sadd.s32 4294967295, %s693_s17   ;;  %p52_p0 = scmp.ne.s32.totalorder %s677_s13, %s673_s12  ;;  %s693_s17 = sphi %s728_s17, %s18_s17   ;;  %s689_s16 = sphi %s726_s16, %s922_s16   ;;  %s685_s15 = sphi %s724_s15, %s921_s15   ;;  %s681_s14 = sphi %s722_s14, %s920_s14   ;;  %s677_s13 = sphi %s720_s13, %s919_s13   ;;  %s673_s12 = sphi %s718_s12, %s918_s12  }
   0x7   : > { %p748_p1 = scmp.eq.s32.totalorder %s466_s18, 0  ;;  %p468_p2 = scmp.ge.s32.totalorder %s693_s17, 1 }
   0x8   : > { %p133_p3 = scmp.lt.s32.totalorder %s693_s17, 3  ;;  %s155_s24 = sshll.u32 %s905_s2, 4  ;;  %s156_s24 = int_to_ptr.vmem [resolvable:$true] %s155_s24 }
   0x9   : > { %s910_s19 = scalar_select %p748_p1, 1, 0 }
   0xa   : > { %p756_p4 = por %p748_p1, %p52_p0  ;;  %p760_p5 = pnand %p468_p2, %p133_p3 }
   0xb   : > { %s30_s26 = sadd.s32 1, %s689_s16  ;;  %s577_s30 = scalar_lea.hbm %s904_s1, 64 }
   0xc   : > { %s911_s20 = scalar_select %p756_p4, 1, 0 }
   0xd   : > { %p511_p6 = pneg %p760_p5  ;;  %p776_p8 = scmp.ge.s32.totalorder %s30_s26, 2 }
   0xe   : > { %p578_p9 = scmp.ne.s32.totalorder %s904_s1, %s577_s30  ;;  %p584_p13 = scmp.lt.u32.totalorder %s577_s30, %s904_s1 }
   0xf   : > { %p771_p7 = pnand %p511_p6, %p748_p1 }
  0x11   : > { %p579_p10 = pneg %p771_p7 }
  0x13   : > { %p580_p11 = pnand %p579_p10, %p578_p9 }
  0x15   : > { %p581_p12 = pneg %p580_p11 }
  0x17   : > { %p586_p0 = pnand %p584_p13, %p581_p12 }
  0x19   : > { %589 = shalt.err (!%p586_p0)
}
  0x1a   : > { %s695_s8 = smov [#allocation6]   ;;  %s590_s11 = scalar_lea.vmem %s156_s24, 16 }
  0x1b   : > { %514 = dma.hbm_to_smem (!%p771_p7), %s904_s1, 64, %s695_s8, [#allocation4]  }
  0x1c   : > { %p591_p2 = scmp.ne.s32.totalorder %s156_s24, %s590_s11  ;;  %p598_p1 = scmp.lt.s32.totalorder %s156_s24, %s156_s24 }
  0x1d   : > { %p599_p9 = scmp.lt.s32.totalorder %s590_s11, %s590_s11 }
  0x1e   : > { %p593_p3 = pnand %p591_p2, %p579_p10 }
  0x1f   : > { %p600_p11 = por %p599_p9, %p598_p1 }
  0x20   : > { %p594_p6 = pneg %p593_p3 }
  0x22   : > { %p601_p4 = pnand %p600_p11, %p594_p6 }
  0x24   : > { %604 = shalt.err (!%p601_p4)
}
  0x25   : > { %s696_s12 = smov [#allocation7]   ;;  %s924_s26 = smov (%p776_p8, %s30_s26), 0 }
  0x26   : > { %517 = dma.vmem_to_smem (!%p771_p7), %s156_s24, 16, %s696_s12, [#allocation5]  }
  0x27   : > { %s39_s18 = sadd.s32 1, %s681_s14  ;;  %p46_p1 = scmp.ne.s32.totalorder %s681_s14, %s677_s13 }
  0x28   : > { %s34_s22 = ssub.s32 %s689_s16, %s924_s26  ;;  %p47_p4 = scmp.eq.s32.totalorder %s693_s17, 0 }
  0x29   : > { %p37_p10 = scmp.eq.s32.totalorder %s34_s22, 0  ;;  %p524_p12 = scmp.lt.s32.totalorder %s693_s17, 2 }
  0x2a   : > { %p48_p13 = por %p47_p4, %p46_p1  ;;  %s166_s23 = sand.u32 1, %s681_s14  }
  0x2b   : > { %s811_s25 = scalar_select %p37_p10, %s681_s14, %s39_s18  }
  0x2c   : > { %s472_s28 = sshll.u32 %s166_s23, 3  ;;  %s499_s29 = sshll.u32 %s689_s16, 7 }
  0x2d   : > { %s817_s24 = scalar_lea.hbm %s903_s0, %s499_s29  ;;  %s170_s27 = scalar_lea.vmem [#allocation2], %s472_s28 }
  0x2e   : > { %s180_s5 = sshll.u32 %s170_s27, 4  ;;  %p821_p7 = pnand %p524_p12, %p48_p13  ;;  %s819_s5 = int_to_ptr.vmem [resolvable:$true] %s180_s5 }
  0x2f   : > { %s167_s7 = scalar_lea.sflag [#allocation3], %s166_s23  ;;  %s605_s8 = scalar_lea.hbm %s817_s24, 128 }
  0x30   : > { %p606_p8 = scmp.ne.s32.totalorder %s817_s24, %s605_s8  ;;  %p607_p0 = pneg %p821_p7 }
  0x31   : > { %s610_s11 = scalar_lea.hbm %s903_s0, 256  ;;  %p611_p6 = scmp.lt.u32.totalorder %s817_s24, %s903_s0 }
  0x32   : > { %p608_p2 = pnand %p607_p0, %p606_p8  ;;  %p612_p9 = scmp.lt.u32.totalorder %s610_s11, %s605_s8 }
  0x33   : > { %p614_p1 = scmp.lt.u32.totalorder %s605_s8, %s817_s24 }
  0x34   : > { %p609_p3 = pneg %p608_p2  ;;  %p613_p11 = por %p612_p9, %p611_p6 }
  0x36   : > { %p615_p4 = por %p614_p1, %p613_p11 }
  0x38   : > { %p616_p10 = pnand %p615_p4, %p609_p3 }
  0x3a   : > { %619 = shalt.err (!%p616_p10)
}
  0x3b   : > { %s620_s22 = scalar_lea.vmem %s819_s5, 128  ;;  %s697_s23 = smov [#allocation2]  }
  0x3c   : > { %p621_p12 = scmp.ne.s32.totalorder %s819_s5, %s620_s22  ;;  %s625_s28 = sshll.u32 %s697_s23, 4  ;;  %s626_s28 = int_to_ptr.vmem [resolvable:$false] %s625_s28 }
  0x3d   : > { %s627_s29 = scalar_lea.vmem %s626_s28, 256  ;;  %p628_p2 = scmp.lt.s32.totalorder %s819_s5, %s626_s28 }
  0x3e   : > { %p623_p13 = pnand %p621_p12, %p607_p0  ;;  %p629_p6 = scmp.lt.s32.totalorder %s627_s29, %s620_s22 }
  0x40   : > { %p624_p8 = pneg %p623_p13  ;;  %p630_p9 = por %p629_p6, %p628_p2 }
  0x42   : > { %p631_p11 = pnand %p630_p9, %p624_p8 }
  0x44   : > { %634 = shalt.err (!%p631_p11)
}
  0x45   : > { %521 = dma.hbm_to_vmem [thread:$0]  (!%p821_p7), %s817_s24, 128, %s819_s5, %s167_s7  }
  0x46   : > { %189 = sbr.rel (%p760_p5) target bundleno = 114 (0x72), region = 32  ;;  %s191_s30 = sand.u32 (!%p760_p5), 1, %s677_s13  }
  0x47   : > { %s476_s4 = sshll.u32 (!%p760_p5), %s191_s30, 3  ;;  %s192_s27 = scalar_lea.sflag (!%p760_p5), [#allocation3], %s191_s30 }
  0x48   : > { %s195_s8 = scalar_lea.vmem (!%p760_p5), [#allocation2], %s476_s4  ;;  %p916_p0 = scmp.ne.s32.totalorder (!%p760_p5), %s911_s20, 0 }
  0x4d   : > { %660 = dma.done.wait (%p916_p0), %s192_s27, 128  }
  0x4e   : > { %662 = vsyncadd (%p916_p0), %s192_s27, 4294967168  ;;  %p917_p3 = scmp.ne.s32.totalorder %s910_s19, 0 }
  0x50   : > { %664 = dma.done.wait (%p917_p3), [#allocation4], 64  }
  0x51   : > { %666 = vsyncadd (%p917_p3), [#allocation4], 4294967232 }
  0x52   : > { %668 = dma.done.wait (%p917_p3), [#allocation5], 16  }
  0x53   : > { %670 = vsyncadd (%p917_p3), [#allocation5], 4294967280 }
  0x54   : > { %208 = sfence }
  0x55   : > { %s249_s21 = sld [smem:[#allocation6]]  ;;  %s484_s5 = sld [smem:[#allocation6 + $0x1]]  ;;  %v242_v0 = vld [vmem:[%s195_s8] ss:$4 sm:$0x3]  ;;  %v304_v1 = vlaneseq  ;;  %vm336_vm0 = vcmask 1040384  }
  0x56   : > { %s252_s24 = sld [smem:[#allocation7]]  ;;  %s485_s6 = sld [smem:[#allocation6 + $0x2]]  ;;  %v481_v2 = vld [vmem:[%s195_s8 + $0x1] ss:$4 sm:$0x3]  ;;  %vm339_vm1 = vcmask 1041408  }
  0x57   : > { %s486_s20 = sld [smem:[#allocation6 + $0x3]]  ;;  %v482_v3 = vld [vmem:[%s195_s8 + $0x2] ss:$4 sm:$0x3]  ;;  %s487_s7 = sld [smem:[#allocation6 + $0x80]]  ;;  %v305_v7 = vshrl.u32 %v304_v1, 7 }
  0x58   : > { %s865_s9 = sld [smem:[#allocation7 + $0x1]]  ;;  %s490_s11 = sld [smem:[#allocation6 + $0x82]]  ;;  %v483_v6 = vld [vmem:[%s195_s8 + $0x3] ss:$4 sm:$0x3] }
  0x59   : > { %s489_s10 = sld [smem:[#allocation6 + $0x81]]  ;;  %s867_s19 = sld [smem:[#allocation6 + $0x83]]  ;;  %v306_v18 = vsub.s32 0, %v305_v7  ;;  %v310_v26 = vsub.s32 1, %v305_v7 }
  0x5a   : > { %s492_s12 = sld [smem:[#allocation6 + $0x100]]  ;;  %s869_s18 = sld [smem:[#allocation7 + $0x2]] }
  0x5b   : > { %v250_v4 = vstv %s249_s21  ;;  %v256_v9 = vstv %s484_s5  ;;  %s871_s22 = sld [smem:[#allocation6 + $0x101]]  ;;  %s495_s23 = sld [smem:[#allocation6 + $0x102]] }
  0x5c   : > { %v251_v5 = vmul.f32 %v250_v4, %v242_v0  ;;  %v253_v8 = vstv %s252_s24  ;;  %v257_v11 = vmul.f32 %v481_v2, %v256_v9  ;;  %v260_v12 = vstv %s485_s6  ;;  %s873_s28 = sld [smem:[#allocation6 + $0x103]]  ;;  %p233_p5 = scmp.lt.s32.totalorder %s685_s15, 1 }
  0x5d   : > { %v261_v13 = vmul.f32 %v482_v3, %v260_v12  ;;  %v264_v14 = vstv %s486_s20  ;;  %v268_v16 = vstv %s487_s7 }
  0x5e   : > { %v254_v10 = vadd.f32 %v253_v8, %v251_v5  ;;  %v271_v17 = vstv %s865_s9  ;;  %v265_v19 = vmul.f32 %v483_v6, %v264_v14  ;;  %v269_v20 = vmul.f32 %v268_v16, %v242_v0  ;;  %s926_s15 = smov (!%p233_p5, %s685_s15), 1 }
  0x5f   : > { %v274_v21 = vstv %s489_s10  ;;  %v278_v22 = vstv %s490_s11  ;;  %v282_v25 = vstv %s867_s19  ;;  %s500_s29 = sshll.u32 %s926_s15, 3 }
  0x60   : > { %v258_v15 = vadd.f32 %v257_v11, %v254_v10  ;;  %v275_v24 = vmul.f32 %v481_v2, %v274_v21  ;;  %v272_v27 = vadd.f32 %v271_v17, %v269_v20  ;;  %v279_v28 = vmul.f32 %v482_v3, %v278_v22  ;;  %s240_s27 = scalar_lea.vmem %s906_s3, %s500_s29 }
  0x61   : > { %v286_v29 = vstv %s492_s12  ;;  %v289_v30 = vstv %s869_s18  ;;  %v283_v31 = vmul.f32 %v483_v6, %v282_v25  ;;  %v292_v33 = vstv %s871_s22 }
  0x62   : > { %v262_v23 = vadd.f32 %v261_v13, %v258_v15  ;;  %v287_v32 = vmul.f32 %v286_v29, %v242_v0  ;;  %v296_v34 = vstv %s495_s23  ;;  %v276_v36 = vadd.f32 %v275_v24, %v272_v27 }
  0x63   : > { %v293_v37 = vmul.f32 %v481_v2, %v292_v33  ;;  %v300_v38 = vstv %s873_s28  ;;  %v297_v40 = vmul.f32 %v482_v3, %v296_v34 }
  0x64   : > { %v266_v35 = vadd.f32 %v265_v19, %v262_v23  ;;  %v290_v39 = vadd.f32 %v289_v30, %v287_v32  ;;  %v280_v41 = vadd.f32 %v279_v28, %v276_v36  ;;  %v301_v43 = vmul.f32 %v483_v6, %v300_v38 }
  0x66   : > { %v294_v42 = vadd.f32 %v293_v37, %v290_v39  ;;  %v284_v44 = vadd.f32 %v283_v31, %v280_v41  ;;  %v307_v45 = vrot.slane %v266_v35, %v306_v18  ;;  %v311_v46 = vrot.slane %v266_v35, %v310_v26 }
  0x68   : > { %v298_v47 = vadd.f32 %v297_v40, %v294_v42  ;;  %v318_v48 = vrot.slane %v284_v44, %v306_v18  ;;  %v322_v49 = vrot.slane %v284_v44, %v310_v26 }
  0x6a   : > { %v302_v50 = vadd.f32 %v301_v43, %v298_v47  ;;  %v337_v51 = vsel %vm336_vm0, %v307_v45, %v318_v48  ;;  %v338_v52 = vsel %vm336_vm0, %v311_v46, %v322_v49 }
  0x6c   : > { %v329_v53 = vrot.slane %v302_v50, %v306_v18  ;;  %v333_v54 = vrot.slane %v302_v50, %v310_v26 }
  0x6e   : > { %v340_v55 = vsel %vm339_vm1, %v337_v51, %v329_v53  ;;  %v341_v56 = vsel %vm339_vm1, %v338_v52, %v333_v54 }
  0x6f   : > { %v344_v57 = vcombine.low %v340_v55, %v341_v56 }
  0x71   : > { %346 = vst [vmem:[%s240_s27] sm:$0x77] %v344_v57 }
  0x72 PF: > { %s18_s17 = sadd.s32 1, %s693_s17   ;;  %s918_s12 = smov %s677_s13 }
  0x73   : > { %p15_p7 = scmp.ge.s32.totalorder %s18_s17, 4   ;;  %s919_s13 = smov %s681_s14 }
  0x74   : > { %s920_s14 = smov %s811_s25  ;;  %s921_s15 = smov %s689_s16 }
  0x75   : > { %s922_s16 = smov %s924_s26  ;;  %17 = sbr.rel (!%p15_p7) target bundleno = 6 (0x6), region = 85 }
  0x7c   :  { %377 = vsyncpa [#allocation3], 1 }
  0x7d   :  { %379 = vsyncpa [#allocation3 + $0x1], 1 }
  0x7e   :  { %380 = vsyncpa [#allocation4], 1 }
  0x7f   :  { %382 = vsyncpa [#allocation4 + $0x1], 1 }
  0x80   :  { %383 = vsyncpa [#allocation5], 1 }
  0x81   :  { %385 = vsyncpa [#allocation5 + $0x1], 1 }

</bundles_post_ra>
